<compile_context>
chip_gen: v6e
topology: v6e:2x2x1
jax: 0.10.0
libtpu: 0.0.40
codegen_flags: <defaults>
</compile_context>

<pallas_src>
import functools

import jax
import jax.numpy as jnp
from jax import lax
from jax.experimental import pallas as pl
from jax.experimental.pallas import tpu as pltpu


def _round_up(x, m):
    return (x + m - 1) // m * m


def _cdiv(a, b):
    return -(-a // b)


def _sum_kernel(x_ref, w_ref, o_ref, *, TN, R):
    """Grid (B, n_tiles).

    x_ref: (TN+R-1, C*S) halo'd chunk tile (minor dim is channel-major C*S)
    w_ref: (F, R*C*S)    filterbank, contraction ordered (r, c, s)
    o_ref: (F, TN)       output tile, already in (feature, frame) layout
    """
    pieces = [x_ref[r:r + TN, :] for r in range(R)]        # R wide slices
    lhs = jnp.concatenate(pieces, axis=-1) if R > 1 else pieces[0]  # (TN, R*C*S)
    # (F, K) x (TN, K) -> (F, TN): the channel sum is folded into the
    # contraction and the result is emitted transposed, so the wrapper never
    # runs an extra HBM pass over the (dominant) output tensor.
    o_ref[...] = lax.dot_general(
        w_ref[...], lhs,
        dimension_numbers=(((1,), (1,)), ((), ())),
        preferred_element_type=jnp.float32,
    ).astype(o_ref.dtype)


def _chanwise_kernel(x_ref, w_ref, o_ref, *, TN, R):
    """Grid (C, B, n_tiles).

    x_ref: (TN+R-1, S) per-channel halo'd chunk tile
    w_ref: (F, Kp)     one channel's filterbank (K zero-padded to Kp = R*S)
    o_ref: (F, TN)     output tile for this (b, c, t)
    """
    pieces = [x_ref[r:r + TN, :] for r in range(R)]
    lhs = jnp.concatenate(pieces, axis=-1) if R > 1 else pieces[0]  # (TN, Kp)
    o_ref[...] = lax.dot_general(
        w_ref[...], lhs,
        dimension_numbers=(((1,), (1,)), ((), ())),
        preferred_element_type=jnp.float32,
    ).astype(o_ref.dtype)


def par_encoder(x, filters, stride, return_chanwise=False,
                frames_per_tile=1024, compute_dtype=None):
    """x: (B, C, T); filters: (C, F, K) (one Encoder filterbank per channel).

    compute_dtype: optionally cast inputs/weights (e.g. jnp.bfloat16) to halve
    HBM read bytes on the memory-bound path; accumulation stays f32 and the
    output keeps x.dtype.
    """
    B, C, T = x.shape
    Cw, F, K = filters.shape
    c_used = min(C, Cw)            # mirrors min(len(self.coders), x.shape[1])
    S = int(stride)
    assert T >= K, "input shorter than kernel_size"
    N = (T - K) // S + 1           # conv1d output frames (no padding)
    R = _cdiv(K, S)                # chunks of `stride` samples per frame
    Kp = R * S                     # per-channel contraction length (K padded)

    # ---- frame tiling ------------------------------------------------------
    # TN is a multiple of 128 whenever n_tiles > 1 so the lane-dense (F, TN)
    # output stores stay unmasked; for a single tile TN equals the full
    # (8-aligned) extent.
    Npad = _round_up(N, 8)
    req = max(8, min(_round_up(frames_per_tile, 8), Npad))
    n_tiles = _cdiv(Npad, req)
    if B == 1 and n_tiles == 1 and Npad >= 256:
        n_tiles = 2                # let both v7x TensorCores get work
    if n_tiles == 1:
        TN = Npad
    else:
        TN = _round_up(_cdiv(Npad, n_tiles), 128)
        n_tiles = _cdiv(Npad, TN)
        if R - 1 > TN:             # pathological K >> stride * tile
            n_tiles, TN = 1, Npad
    NT = TN * n_tiles
    Tcp = NT + R - 1               # chunk rows incl. the last tile's halo
    Tp = Tcp * S

    dt = x.dtype if compute_dtype is None else jnp.dtype(compute_dtype)
    out_dt = x.dtype
    isz = jnp.dtype(dt).itemsize
    osz = jnp.dtype(out_dt).itemsize

    # Chunked input (B, C', Tcp, S): tail pad + reshape only; the K/stride-
    # inflated im2col copy is never materialized in HBM.
    xt = x[:, :c_used, :]
    xt = jnp.pad(xt, ((0, 0), (0, 0), (0, max(0, Tp - T))))[:, :, :Tp]
    xt = xt.astype(dt)
    xc0 = xt.reshape(B, c_used, Tcp, S)      # [b, c, t, s] = x[b, c, t*S + s]

    # Weights zero-padded along kernel taps K -> Kp.
    wp = jnp.zeros((c_used, F, Kp), dt).at[:, :, :K].set(
        filters[:c_used].astype(dt))

    def _halo_tile(a):
        """(..., Tcp, minor) -> (..., n_tiles, TN+R-1, minor), halo rows of the
        next tile duplicated (~(R-1)/TN extra HBM)."""
        lead, minor = a.shape[:-2], a.shape[-1]
        if n_tiles == 1:
            return a.reshape(*lead, 1, Tcp, minor)
        main = a[..., :NT, :].reshape(*lead, n_tiles, TN, minor)
        if R == 1:
            return main
        halo = a[..., TN:, :]
        halo = jnp.pad(halo,
                       [(0, 0)] * len(lead) + [(0, NT - halo.shape[-2]), (0, 0)])
        halo = halo.reshape(*lead, n_tiles, TN, minor)[..., :R - 1, :]
        return jnp.concatenate([main, halo], axis=-2)

    vmem_limit = 32 * 1024 * 1024  # blocks total a few MiB; safe on v5e..v7x

    if not return_chanwise:
        # ---- summed path: channel reduction folded into the contraction ----
        CS = c_used * S
        # repack minor dim S -> C*S so the in-kernel im2col is R wide slices
        xr = _halo_tile(
            jnp.transpose(xc0, (0, 2, 1, 3)).reshape(B, Tcp, CS))
        # (c, f, k) -> (f, (r, c, s)) to match the lhs column ordering
        w_sum = jnp.transpose(
            wp.reshape(c_used, F, R, S), (1, 2, 0, 3)).reshape(F, R * CS)

        cost = pl.CostEstimate(
            flops=2 * B * n_tiles * TN * F * R * CS,
            transcendentals=0,
            bytes_accessed=(xr.size + w_sum.size) * isz + B * F * NT * osz,
        )
        kernel = functools.partial(_sum_kernel, TN=TN, R=R)
        out = pl.pallas_call(
            kernel,
            out_shape=jax.ShapeDtypeStruct((B, F, NT), out_dt),
            grid_spec=pltpu.PrefetchScalarGridSpec(
                num_scalar_prefetch=0,
                grid=(B, n_tiles),
                in_specs=[
                    pl.BlockSpec((None, None, TN + R - 1, CS),
                                 lambda b, t: (b, t, 0, 0)),
                    # constant block index -> weights are DMA'd exactly once
                    pl.BlockSpec((F, R * CS), lambda b, t: (0, 0)),
                ],
                out_specs=pl.BlockSpec((None, F, TN), lambda b, t: (b, 0, t)),
            ),
            compiler_params=pltpu.CompilerParams(
                dimension_semantics=("parallel", "parallel"),
                vmem_limit_bytes=vmem_limit,
            ),
            cost_estimate=cost,
        )(xr, w_sum)
        # TODO(synk): consumers that accept NT (8/128-padded) frames can skip
        # this trailing slice copy.
        return out[:, :, :N]
    else:
        # ---- channel-wise path ---------------------------------------------
        xcw = _halo_tile(xc0)        # (B, C', n_tiles, TN+R-1, S)
        cost = pl.CostEstimate(
            flops=2 * B * c_used * n_tiles * TN * F * Kp,
            transcendentals=0,
            bytes_accessed=(xcw.size + wp.size) * isz
            + B * c_used * F * NT * osz,
        )
        kernel = functools.partial(_chanwise_kernel, TN=TN, R=R)
        out = pl.pallas_call(
            kernel,
            out_shape=jax.ShapeDtypeStruct((B, c_used, F, NT), out_dt),
            grid_spec=pltpu.PrefetchScalarGridSpec(
                num_scalar_prefetch=0,
                # channel outermost: W_c block index constant across (b, t),
                # so each channel's weights are DMA'd once.
                grid=(c_used, B, n_tiles),
                in_specs=[
                    pl.BlockSpec((None, None, None, TN + R - 1, S),
                                 lambda c, b, t: (b, c, t, 0, 0)),
                    pl.BlockSpec((None, F, Kp), lambda c, b, t: (c, 0, 0)),
                ],
                out_specs=pl.BlockSpec((None, None, F, TN),
                                       lambda c, b, t: (b, c, 0, t)),
            ),
            compiler_params=pltpu.CompilerParams(
                dimension_semantics=("parallel", "parallel", "parallel"),
                vmem_limit_bytes=vmem_limit,
            ),
            cost_estimate=cost,
        )(xcw, wp)
        return out[:, :, :, :N]


if __name__ == "__main__":
    # small shapes consistent with the module: B=2 mixtures, C=4 input
    # channels (one Encoder per channel), T=128 samples, filterbank with
    # n_feats_out=128 filters of kernel_size=16, stride=8.
    B, C, T = 2, 4, 128
    F, K, stride = 128, 16, 8

    key = jax.random.PRNGKey(0)
    kx, kw = jax.random.split(key)
    x = jax.random.normal(kx, (B, C, T), dtype=jnp.float32)
    # Encoder c has conv1d weight (F, 1, K) -> stored squeezed as (C, F, K)
    filters = jax.random.normal(kw, (C, F, K), dtype=jnp.float32) * 0.1

    out_sum = jax.block_until_ready(
        par_encoder(x, filters, stride, return_chanwise=False)
    )
    out_cw = jax.block_until_ready(
        par_encoder(x, filters, stride, return_chanwise=True)
    )

    # pure-JAX reference for correctness
    N = (T - K) // stride + 1
    idx = (jnp.arange(N) * stride)[:, None] + jnp.arange(K)[None, :]
    patches = x[:, :, idx]                                   # (B, C, N, K)
    ref_cw = jnp.einsum("bcnk,cfk->bcfn", patches, filters)  # (B, C, F, N)
    ref_sum = ref_cw.sum(axis=1)                             # (B, F, N)

    assert out_sum.shape == (B, F, N)
    assert out_cw.shape == (B, C, F, N)
    assert jnp.allclose(out_sum, ref_sum, atol=2e-3, rtol=2e-3)
    assert jnp.allclose(out_cw, ref_cw, atol=2e-3, rtol=2e-3)

    # TODO(synk): base Encoder applies no nonlinearity; filterbanks that add
    # one (e.g. ReLU) would be a single extra VPU op in the kernel epilogue.
    print("KERNEL_OK")
</pallas_src>

<mosaic_0001>
module attributes {stable_mosaic.version = 11 : i64} {
  func.func @_sum_kernel(%arg0: i32, %arg1: i32, %arg2: memref<1x1x17x32xf32, #tpu.memory_space<vmem>>, %arg3: memref<128x64xf32, #tpu.memory_space<vmem>>, %arg4: memref<1x128x16xf32, #tpu.memory_space<vmem>>) attributes {dimension_semantics = [#tpu.dimension_semantics<parallel>, #tpu.dimension_semantics<parallel>], iteration_bounds = array<i64: 2, 1>, scalar_prefetch = 0 : i64, scratch_operands = 0 : i64, tpu.core_type = #tpu.core_type<tc>, window_params = [{transform_indices = @transform_0, window_bounds = array<i64: 1, 1, 17, 32>}, {pipeline_mode = #tpu.pipeline_mode<synchronous>, transform_indices = @transform_1, window_bounds = array<i64: 128, 64>}, {transform_indices = @transform_2, window_bounds = array<i64: 1, 128, 16>}]} {
    %c0 = arith.constant 0 : index
    %c0_0 = arith.constant 0 : index
    %c0_1 = arith.constant 0 : index
    %c0_2 = arith.constant 0 : index
    %0 = vector.load %arg2[%c0, %c0_0, %c0_1, %c0_2] : memref<1x1x17x32xf32, #tpu.memory_space<vmem>>, vector<1x1x16x32xf32>
    %1 = vector.shape_cast %0 : vector<1x1x16x32xf32> to vector<16x32xf32>
    %c0_3 = arith.constant 0 : index
    %c0_4 = arith.constant 0 : index
    %c1 = arith.constant 1 : index
    %c0_5 = arith.constant 0 : index
    %2 = vector.load %arg2[%c0_3, %c0_4, %c1, %c0_5] : memref<1x1x17x32xf32, #tpu.memory_space<vmem>>, vector<1x1x16x32xf32>
    %3 = vector.shape_cast %2 : vector<1x1x16x32xf32> to vector<16x32xf32>
    %4 = tpu.concatenate %1, %3 in 1 : vector<16x32xf32>, vector<16x32xf32> -> vector<16x64xf32>
    %c0_6 = arith.constant 0 : index
    %c0_7 = arith.constant 0 : index
    %5 = vector.load %arg3[%c0_6, %c0_7] : memref<128x64xf32, #tpu.memory_space<vmem>>, vector<128x64xf32>
    %cst = arith.constant dense<0.000000e+00> : vector<128x16xf32>
    %6 = tpu.matmul %5, %4, %cst {dimension_numbers = #tpu.dot_dimension_numbers<[1], [1], [0], [0], [0, 0, 1, 0], [], []>} : vector<128x64xf32>, vector<16x64xf32>, vector<128x16xf32> -> vector<128x16xf32>
    %c0_8 = arith.constant 0 : index
    %c0_9 = arith.constant 0 : index
    %c0_10 = arith.constant 0 : index
    %7 = vector.load %arg4[%c0_8, %c0_9, %c0_10] : memref<1x128x16xf32, #tpu.memory_space<vmem>>, vector<1x128x16xf32>
    %8 = vector.shape_cast %7 : vector<1x128x16xf32> to vector<128x16xf32>
    %9 = vector.shape_cast %6 : vector<128x16xf32> to vector<1x128x16xf32>
    tpu.vector_store %arg4[%c0_8, %c0_9, %c0_10], %9 {strides = array<i32>} : memref<1x128x16xf32, #tpu.memory_space<vmem>>, vector<1x128x16xf32>,
    return
  }
  func.func @transform_0(%arg0: i32, %arg1: i32) -> (i32, i32, i32, i32) {
    %c0_i32 = arith.constant 0 : i32
    %c0_i32_0 = arith.constant 0 : i32
    %c0_i32_1 = arith.constant 0 : i32
    return %arg0, %arg1, %c0_i32, %c0_i32_0 : i32, i32, i32, i32
  }
  func.func @transform_1(%arg0: i32, %arg1: i32) -> (i32, i32) {
    %c0_i32 = arith.constant 0 : i32
    %c0_i32_0 = arith.constant 0 : i32
    %c0_i32_1 = arith.constant 0 : i32
    return %c0_i32, %c0_i32_0 : i32, i32
  }
  func.func @transform_2(%arg0: i32, %arg1: i32) -> (i32, i32, i32) {
    %c0_i32 = arith.constant 0 : i32
    %c0_i32_0 = arith.constant 0 : i32
    return %arg0, %c0_i32, %arg1 : i32, i32, i32
  }
}

</mosaic_0001>

<bundles_post_ra>
// kernel: tpu_custom_call.1
= control target key start
LH: loop header
LB: loop body
LE: loop exit
PB: predicated region body
PF: predicated region fallthrough
CT: control target
= control target key end

     0   :  { %s657_s9 = smov 0   ;;  %s659_s10 = smov 0   ;;  %s800_s0 = inlined_call_operand.vmem [shape: f32[2,1,17,32], index: 0, kind: input, shape index: {}]   ;;  %s801_s1 = inlined_call_operand.vmem [shape: f32[128,64], index: 1, kind: input, shape index: {}]   ;;  %s802_s2 = inlined_call_operand.vmem [shape: f32[2,128,16], index: 2, kind: output, shape index: {}]  }
   0x1   :  { %s661_s11 = smov 0  }
   0x2 LB: > { %s24_s12 = sadd.s32 1, %s635_s10  ;;  %p516_p0 = scmp.ge.s32.totalorder %s639_s11, 1  ;;  %s639_s11 = sphi %s661_s11, %s12_s11   ;;  %s635_s10 = sphi %s659_s10, %s804_s10   ;;  %s631_s9 = sphi %s657_s9, %s803_s9  }
   0x3   : > { %p26_p1 = scmp.ge.s32.totalorder %s24_s12, 2  ;;  %p132_p2 = scmp.lt.s32.totalorder %s639_s11, 3 }
   0x5   : > { %s806_s12 = smov (%p26_p1, %s24_s12), 0  ;;  %p133_p3 = pnand %p516_p0, %p132_p2 }
   0x6   : > { %p161_p4 = scmp.lt.s32.totalorder (!%p133_p3), %s631_s9, 1  ;;  %s641_s21 = smov (!%p133_p3), 32  }
   0x7   : > { %136 = sbr.rel (%p133_p3) target bundleno = 349 (0x15d), region = 28 }
   0xc   : > { %vm209_vm0 = vcmask 523264   ;;  %v193_v0 = vld [vmem:[%s801_s1] sm:$0xff]  ;;  %s808_s9 = smov (!%p161_p4, %s631_s9), 1  ;;  %vm190_vm1 = vcmask 261120   ;;  %v194_v10 = vld [vmem:[%s801_s1 + $0x8] sm:$0xff]  ;;  %v195_v12 = vld [vmem:[%s801_s1 + $0x10] sm:$0xff] }
   0xd   : > { %v201_v1 = vld [vmem:[%s801_s1 + $0x40] sm:$0xff]  ;;  %563 = vmatprep.mubr.msk.f32.mxu0 %vm209_vm0, %v193_v0  ;;  %s591_s17 = smul.u32 24, %s808_s9  ;;  %v202_v11 = vld [vmem:[%s801_s1 + $0x48] sm:$0xff]  ;;  %v203_v13 = vld [vmem:[%s801_s1 + $0x50] sm:$0xff]  ;;  %s540_s26 = sshll.u32 %s808_s9, 7  ;;  %vm409_vm2 = vcmask 130048  }
   0xe   : > { %575 = vmatprep.mubr.msk.f32.mxu1 %vm209_vm0, %v201_v1  ;;  %v196_v14 = vld [vmem:[%s801_s1 + $0x18] sm:$0xff]  ;;  %v197_v16 = vld [vmem:[%s801_s1 + $0x20] sm:$0xff]  ;;  %v198_v18 = vld [vmem:[%s801_s1 + $0x28] sm:$0xff]  ;;  %s757_s29 = scalar_lea.vmem %s802_s2, %s540_s26 }
   0xf   : > { %s169_s20 = scalar_lea.vmem %s800_s0, %s591_s17  ;;  %v204_v15 = vld [vmem:[%s801_s1 + $0x58] sm:$0xff]  ;;  %v205_v17 = vld [vmem:[%s801_s1 + $0x60] sm:$0xff]  ;;  %v206_v19 = vld [vmem:[%s801_s1 + $0x68] sm:$0xff] }
  0x10   : > { %v181_v2 = vld [vmem:[%s169_s20 + $0x9] sm:$0xff]  ;;  %v180_v3 = vld [vmem:[%s169_s20 + $0x1] sm:$0xff]  ;;  %v200_v22 = vld [vmem:[%s801_s1 + $0x38] sm:$0xff] }
  0x11   : > { %186 = vrot.lane.b32.xlu0 %v181_v2, %s641_s21  ;;  %v179_v4 = vld [vmem:[%s169_s20 + $0x8] sm:$0xff]  ;;  %v178_v7 = vld [vmem:[%s169_s20] sm:$0xff]  ;;  %v199_v20 = vld [vmem:[%s801_s1 + $0x30] sm:$0xff] }
  0x12   : > { %v207_v21 = vld [vmem:[%s801_s1 + $0x70] sm:$0xff]  ;;  %v208_v23 = vld [vmem:[%s801_s1 + $0x78] sm:$0xff] }
  0x15   : > { %184 = vrot.lane.b32.xlu0 %v180_v3, %s641_s21 }
  0x83   : > { %v187_v5 = vpop.permute.xlu0 %186 }
  0x84   : > { %v192_v6 = vsel %vm190_vm1, %v179_v4, %v187_v5 }
  0x85   : > { %559 = vmatprep.subr.msk.mxu0 %vm209_vm0, %v192_v6  ;;  %587 = vmatprep.subr.msk.mxu1 %vm209_vm0, %v192_v6 }
  0x86   : > { %560 = vmatpush3.xpose.msk.msra.mxu0 %vm209_vm0, %v192_v6  ;;  %589 = vmatpush3.xpose.msk.msra.mxu1 %vm209_vm0, %v192_v6 }
  0x87   : > { %v185_v8 = vpop.permute.xlu0 %184 }
  0x88   : > { %v191_v9 = vsel %vm190_vm1, %v178_v7, %v185_v8 }
  0x89   : > { %561 = vmatprep.subr.msk.mxu0 %vm209_vm0, %v191_v9  ;;  %588 = vmatprep.subr.msk.mxu1 %vm209_vm0, %v191_v9 }
  0x8a   : > { %562 = vmatpush3.xpose.msk.msra.mxu0 %vm209_vm0, %v191_v9  ;;  %590 = vmatpush3.xpose.msk.msra.mxu1 %vm209_vm0, %v191_v9 }
  0x8d   : > { %564 = vmatmul.mubr.msk.f32.vlgmr.msra.gmra.mxu0 %vm209_vm0, %v194_v10  ;;  %576 = vmatmul.mubr.msk.f32.vlgmr.msra.gmra.mxu1 %vm209_vm0, %v202_v11 }
  0x8e   : > { %566 = vmatprep.mubr.msk.f32.mxu0 %vm209_vm0, %v195_v12  ;;  %578 = vmatprep.mubr.msk.f32.mxu1 %vm209_vm0, %v203_v13 }
  0x91   : > { %567 = vmatmul.mubr.msk.f32.gmra.mxu0 %vm209_vm0, %v196_v14  ;;  %579 = vmatmul.mubr.msk.f32.gmra.mxu1 %vm209_vm0, %v204_v15 }
  0x92   : > { %569 = vmatprep.mubr.msk.f32.mxu0 %vm209_vm0, %v197_v16  ;;  %581 = vmatprep.mubr.msk.f32.mxu1 %vm209_vm0, %v205_v17 }
  0x95   : > { %570 = vmatmul.mubr.msk.f32.gmra.mxu0 %vm209_vm0, %v198_v18  ;;  %582 = vmatmul.mubr.msk.f32.gmra.mxu1 %vm209_vm0, %v206_v19 }
  0x96   : > { %572 = vmatprep.mubr.msk.f32.mxu0 %vm209_vm0, %v199_v20  ;;  %584 = vmatprep.mubr.msk.f32.mxu1 %vm209_vm0, %v207_v21 }
  0x99   : > { %573 = vmatmul.mubr.msk.f32.gmra.mxu0 %vm209_vm0, %v200_v22  ;;  %585 = vmatmul.mubr.msk.f32.gmra.mxu1 %vm209_vm0, %v208_v23 }
 0x14d   : > { %v565_v24 = vpop.f32.mrf.mxu0  ;;  %v577_v25 = vpop.f32.mrf.mxu1 }
 0x14e   : > { %411 = vst.msk [vmem:[%s757_s29 + $0x8] sm:$0xff] %vm409_vm2, %v565_v24  ;;  %419 = vst.msk [vmem:[%s757_s29 + $0x48] sm:$0xff] %vm409_vm2, %v577_v25 }
 0x14f   : > { %v330_v26 = vpop.f32.mrf.mxu0  ;;  %v370_v27 = vpop.f32.mrf.mxu1 }
 0x150   : > { %410 = vst.msk [vmem:[%s757_s29] sm:$0xff] %vm409_vm2, %v330_v26  ;;  %418 = vst.msk [vmem:[%s757_s29 + $0x40] sm:$0xff] %vm409_vm2, %v370_v27 }
 0x151   : > { %v568_v28 = vpop.f32.mrf.mxu0  ;;  %v580_v29 = vpop.f32.mrf.mxu1 }
 0x152   : > { %413 = vst.msk [vmem:[%s757_s29 + $0x18] sm:$0xff] %vm409_vm2, %v568_v28  ;;  %421 = vst.msk [vmem:[%s757_s29 + $0x58] sm:$0xff] %vm409_vm2, %v580_v29 }
 0x153   : > { %v340_v30 = vpop.f32.mrf.mxu0  ;;  %v380_v31 = vpop.f32.mrf.mxu1 }
 0x154   : > { %412 = vst.msk [vmem:[%s757_s29 + $0x10] sm:$0xff] %vm409_vm2, %v340_v30  ;;  %420 = vst.msk [vmem:[%s757_s29 + $0x50] sm:$0xff] %vm409_vm2, %v380_v31 }
 0x155   : > { %v571_v32 = vpop.f32.mrf.mxu0  ;;  %v583_v33 = vpop.f32.mrf.mxu1 }
 0x156   : > { %415 = vst.msk [vmem:[%s757_s29 + $0x28] sm:$0xff] %vm409_vm2, %v571_v32  ;;  %423 = vst.msk [vmem:[%s757_s29 + $0x68] sm:$0xff] %vm409_vm2, %v583_v33 }
 0x157   : > { %v350_v34 = vpop.f32.mrf.mxu0  ;;  %v390_v35 = vpop.f32.mrf.mxu1 }
 0x158   : > { %414 = vst.msk [vmem:[%s757_s29 + $0x20] sm:$0xff] %vm409_vm2, %v350_v34  ;;  %422 = vst.msk [vmem:[%s757_s29 + $0x60] sm:$0xff] %vm409_vm2, %v390_v35 }
 0x159   : > { %v574_v36 = vpop.f32.mrf.mxu0  ;;  %v586_v37 = vpop.f32.mrf.mxu1 }
 0x15a   : > { %417 = vst.msk [vmem:[%s757_s29 + $0x38] sm:$0xff] %vm409_vm2, %v574_v36  ;;  %425 = vst.msk [vmem:[%s757_s29 + $0x78] sm:$0xff] %vm409_vm2, %v586_v37 }
 0x15b   : > { %v360_v38 = vpop.f32.mrf.mxu0  ;;  %v400_v39 = vpop.f32.mrf.mxu1 }
 0x15c   : > { %416 = vst.msk [vmem:[%s757_s29 + $0x30] sm:$0xff] %vm409_vm2, %v360_v38  ;;  %424 = vst.msk [vmem:[%s757_s29 + $0x70] sm:$0xff] %vm409_vm2, %v400_v39 }
 0x15d PF: > { %s12_s11 = sadd.s32 1, %s639_s11   ;;  %s803_s9 = smov %s635_s10 }
 0x15e   : > { %p9_p5 = scmp.ge.s32.totalorder %s12_s11, 4   ;;  %s804_s10 = smov %s806_s12 }
 0x160   :  { %11 = sbr.rel (!%p9_p5) target bundleno = 2 (0x2), region = 58 }

</bundles_post_ra>
